<compile_context>
chip_gen: v6e
topology: v6e:2x2x1
jax: 0.10.0
libtpu: 0.0.40
codegen_flags: <defaults>
</compile_context>

<pallas_src>
import jax
import jax.numpy as jnp
from jax.experimental import pallas as pl
from jax.experimental.pallas import tpu as pltpu


# ---------------------------------------------------------------------------
# Pallas kernel: hyperpixel correlation + normalization epilogue
# ---------------------------------------------------------------------------
def _dhpf_corr_kernel(src_ref, trg_ref, sn_ref, tn_ref, out_ref):
    s = src_ref[0]                                   # (tm, Cp) bf16
    t = trg_ref[0]                                   # (Cp, tn) bf16
    # correlation[i, j] = sum_c s[i, c] * t[c, j]   (== torch.bmm(src^T, trg))
    corr = jnp.dot(s, t, preferred_element_type=jnp.float32)     # (tm, tn) f32
    # denom = ||src_i|| * ||trg_j|| + 1e-3   (eps added AFTER the product)
    denom = sn_ref[0] * tn_ref[0] + 0.001                         # (tm, tn)
    c = jnp.maximum(corr * pl.reciprocal(denom, approx=True), 0.0)  # ReLU
    out_ref[0] = c * c                                            # .pow(2)


def _pick_tile(hw, candidates):
    for t in candidates:
        if hw % t == 0:
            return t
    return hw  # full extent always legal


def dhpf_correlation(src_hwc, trg_chw, src_norm, trg_norm):
    """src_hwc: [B,HW,Cp] bf16, trg_chw: [B,Cp,HW] bf16,
       src_norm: [B,HW,1] f32, trg_norm: [B,1,HW] f32 -> [B,HW,HW] f32."""
    B, HWs, Cp = src_hwc.shape
    _, _, HWt = trg_chw.shape
    tm = _pick_tile(HWs, (128, 64, 32, 16, 8))          # sublane-aligned rows
    tn = _pick_tile(HWt, (1024, 512, 256, 128))         # lane-dense stores
    grid = (B, HWs // tm, HWt // tn)

    return pl.pallas_call(
        _dhpf_corr_kernel,
        out_shape=jax.ShapeDtypeStruct((B, HWs, HWt), jnp.float32),
        grid=grid,
        in_specs=[
            pl.BlockSpec((1, tm, Cp), lambda b, i, j: (b, i, 0)),
            pl.BlockSpec((1, Cp, tn), lambda b, i, j: (b, 0, j)),
            pl.BlockSpec((1, tm, 1), lambda b, i, j: (b, i, 0)),
            pl.BlockSpec((1, 1, tn), lambda b, i, j: (b, 0, j)),
        ],
        out_specs=pl.BlockSpec((1, tm, tn), lambda b, i, j: (b, i, j)),
        compiler_params=pltpu.CompilerParams(
            dimension_semantics=("parallel", "parallel", "parallel"),
            vmem_limit_bytes=64 * 1024 * 1024),
    )(src_hwc, trg_chw, src_norm, trg_norm)


# ---------------------------------------------------------------------------
# Plain-JAX glue: synthetic backbone, reduction FFNs, gating, bilinear interp
# ---------------------------------------------------------------------------
def conv1x1(x, w, b):
    # x: [B, Cin, H, W], w: [Cout, Cin], b: [Cout]
    return jnp.einsum('oi,bihw->bohw', w, x) + b[None, :, None, None]


def avg_pool4(x):
    B, C, H, W = x.shape
    return x.reshape(B, C, H // 4, 4, W // 4, 4).mean(axis=(3, 5))


def _interp_matrix(in_size, out_size):
    # bilinear weights, align_corners=True (matches F.interpolate in DHPF)
    coords = jnp.linspace(0.0, float(in_size - 1), out_size)
    lo = jnp.clip(jnp.floor(coords).astype(jnp.int32), 0, max(in_size - 2, 0))
    frac = coords - lo.astype(jnp.float32)
    idx = jnp.arange(out_size)
    m = jnp.zeros((out_size, in_size), jnp.float32)
    m = m.at[idx, lo].add(1.0 - frac)
    m = m.at[idx, jnp.minimum(lo + 1, in_size - 1)].add(frac)
    return m


def bilinear_interp_nchw(x, out_hw):
    B, C, H, W = x.shape
    mh = _interp_matrix(H, out_hw[0])
    mw = _interp_matrix(W, out_hw[1])
    return jnp.einsum('oh,bchw,pw->bcop', mh, x, mw)


def init_params(key, layer_channels=(16, 32, 32, 64), red=8):
    p = {}
    ks = iter(jax.random.split(key, 8 * len(layer_channels) + 8))
    nk = lambda: next(ks)
    p['stem_w'] = 0.2 * jax.random.normal(nk(), (layer_channels[0], 3), jnp.float32)
    p['stem_b'] = 0.1 * jax.random.normal(nk(), (layer_channels[0],), jnp.float32)
    for l in range(1, len(layer_channels)):
        p[f'layer{l}_w'] = 0.2 * jax.random.normal(nk(), (layer_channels[l], layer_channels[l - 1]), jnp.float32)
        p[f'layer{l}_b'] = 0.1 * jax.random.normal(nk(), (layer_channels[l],), jnp.float32)
    for l, c in enumerate(layer_channels):
        p[f'red{l}_w'] = 0.2 * jax.random.normal(nk(), (red, c), jnp.float32)
        p[f'red{l}_b'] = 0.1 * jax.random.normal(nk(), (red,), jnp.float32)
        p[f'red{l}_gamma'] = 1.0 + 0.1 * jax.random.normal(nk(), (red,), jnp.float32)
        p[f'red{l}_beta'] = 0.1 * jax.random.normal(nk(), (red,), jnp.float32)
        p[f'sel{l}_w'] = 0.2 * jax.random.normal(nk(), (2, 2 * red), jnp.float32)
        p[f'sel{l}_b'] = 0.1 * jax.random.normal(nk(), (2,), jnp.float32)
    return p


def backbone_features(img, params, n_layers):
    # TODO(synk): pretrained ResNet-101 bottleneck stack replaced by a small
    # deterministic synthetic extractor (same multi-layer hyperpixel structure).
    feats = []
    x = jax.nn.relu(conv1x1(img, params['stem_w'], params['stem_b']))
    x = avg_pool4(x)                       # backbone stride-4 stem
    feats.append(x)
    for l in range(1, n_layers):
        x = jax.nn.relu(conv1x1(x, params[f'layer{l}_w'], params[f'layer{l}_b']))
        feats.append(x)
    return feats


def reduce_ffn(x, p, l):
    # Conv1x1 -> BatchNorm(eval: running_mean=0, running_var=1) -> ReLU
    y = conv1x1(x, p[f'red{l}_w'], p[f'red{l}_b'])
    y = y * p[f'red{l}_gamma'][None, :, None, None] + p[f'red{l}_beta'][None, :, None, None]
    return jax.nn.relu(y)


def gate(src_red, trg_red, w, b):
    # selection_ffn: 1x1 conv on concat(src, trg) + global-avg-pool -> 2 logits
    pair = jnp.concatenate([src_red, trg_red], axis=1)      # [B, 2*red, h, w]
    pooled = pair.mean(axis=(2, 3))                          # [B, 2*red]
    relevance = pooled @ w.T + b                              # [B, 2]
    probs = jax.nn.softmax(relevance, axis=-1)
    # TODO(synk): training-mode Gumbel-softmax sampling not reproduced; this is
    # the deterministic eval-mode hard selection.
    return (jnp.argmax(probs, axis=-1) == 1).astype(jnp.float32)


def dhpf_forward(src_img, trg_img, params, upsample_size, n_layers=4):
    src_feats = backbone_features(src_img, params, n_layers)
    trg_feats = backbone_features(trg_img, params, n_layers)

    layer_sel = []
    src_blocks, trg_blocks = [], []
    for l in range(n_layers):
        src_red = reduce_ffn(src_feats[l], params, l)
        trg_red = reduce_ffn(trg_feats[l], params, l)
        lsel = gate(src_red, trg_red, params[f'sel{l}_w'], params[f'sel{l}_b'])
        layer_sel.append(lsel)
        w = lsel[:, None, None, None]       # gating scales both src & trg feats
        src_blocks.append(bilinear_interp_nchw(src_red, upsample_size) * w)
        trg_blocks.append(bilinear_interp_nchw(trg_red, upsample_size) * w)
    layer_sel = jnp.stack(layer_sel, axis=1)                 # [B, L]

    # base-correlation fallback for batch elements that selected no layer:
    # additive base block is exactly equivalent to `correlation[empty] += base`.
    empty = (layer_sel.sum(axis=1) == 0).astype(jnp.float32)[:, None, None, None]
    base_src = reduce_ffn(src_feats[0], params, 0)
    base_trg = reduce_ffn(trg_feats[0], params, 0)
    src_blocks.append(bilinear_interp_nchw(base_src, upsample_size) * empty)
    trg_blocks.append(bilinear_interp_nchw(base_trg, upsample_size) * empty)

    src_all = jnp.concatenate(src_blocks, axis=1)            # [B, C_total, Hu, Wu]
    trg_all = jnp.concatenate(trg_blocks, axis=1)

    # --- hoisted per-pixel norms (sqrt of channel sum-of-squares), f32 ---------
    def flat_norm(x):
        B, C, H, W = x.shape
        n = jnp.sqrt(jnp.sum(x.astype(jnp.float32) * x.astype(jnp.float32), axis=1))
        return n.reshape(B, H * W)
    src_norm = flat_norm(src_all)[:, :, None]                # [B, HW, 1]
    trg_norm = flat_norm(trg_all)[:, None, :]                # [B, 1, HW]

    # --- bf16 MXU inputs, channel pad to a multiple of 16 (bf16 sublane) -------
    def to_flat_src(x):                                       # -> [B, HW, Cp] bf16
        B, C, H, W = x.shape
        xt = x.reshape(B, C, H * W).transpose(0, 2, 1)
        pad = (-C) % 16
        if pad:
            xt = jnp.pad(xt, ((0, 0), (0, 0), (0, pad)))
        return xt.astype(jnp.bfloat16)

    def to_flat_trg(x):                                       # -> [B, Cp, HW] bf16
        B, C, H, W = x.shape
        xf = x.reshape(B, C, H * W)
        pad = (-C) % 16
        if pad:
            xf = jnp.pad(xf, ((0, 0), (0, pad), (0, 0)))
        return xf.astype(jnp.bfloat16)

    corr_ts = dhpf_correlation(to_flat_src(src_all), to_flat_trg(trg_all),
                               src_norm, trg_norm)

    # TODO(synk): RHM Hough-matching geometric re-weighting (self.rhm.run) has no
    # clean standalone equivalent here; geometric_scores treated as 1.
    return corr_ts, layer_sel


# ---------------------------------------------------------------------------
if __name__ == "__main__":
    key = jax.random.PRNGKey(0)
    k_src, k_trg, k_par = jax.random.split(key, 3)

    B, img_side = 2, 64
    upsample = (img_side // 4, img_side // 4)                # DHPF: img_side / 4
    src_img = jax.random.normal(k_src, (B, 3, img_side, img_side), jnp.float32)
    trg_img = jax.random.normal(k_trg, (B, 3, img_side, img_side), jnp.float32)
    params = init_params(k_par)

    corr, layer_sel = dhpf_forward(src_img, trg_img, params, upsample)
    corr, layer_sel = jax.block_until_ready((corr, layer_sel))

    hw = upsample[0] * upsample[1]
    assert corr.shape == (B, hw, hw) and corr.dtype == jnp.float32
    assert layer_sel.shape == (B, 4)
    assert bool(jnp.all(jnp.isfinite(corr)))
    print("KERNEL_OK")
</pallas_src>

<mosaic_0001>
module attributes {stable_mosaic.version = 11 : i64} {
  func.func @_dhpf_corr_kernel(%arg0: i32, %arg1: i32, %arg2: i32, %arg3: memref<1x128x48xbf16, #tpu.memory_space<vmem>>, %arg4: memref<1x48x256xbf16, #tpu.memory_space<vmem>>, %arg5: memref<1x128x1xf32, #tpu.memory_space<vmem>>, %arg6: memref<1x1x256xf32, #tpu.memory_space<vmem>>, %arg7: memref<1x128x256xf32, #tpu.memory_space<vmem>>) attributes {dimension_semantics = [#tpu.dimension_semantics<parallel>, #tpu.dimension_semantics<parallel>, #tpu.dimension_semantics<parallel>], iteration_bounds = array<i64: 2, 2, 1>, scalar_prefetch = 0 : i64, scratch_operands = 0 : i64, tpu.core_type = #tpu.core_type<tc>, window_params = [{transform_indices = @transform_0, window_bounds = array<i64: 1, 128, 48>}, {transform_indices = @transform_1, window_bounds = array<i64: 1, 48, 256>}, {transform_indices = @transform_2, window_bounds = array<i64: 1, 128, 1>}, {transform_indices = @transform_3, window_bounds = array<i64: 1, 1, 256>}, {transform_indices = @transform_4, window_bounds = array<i64: 1, 128, 256>}]} {
    %c0 = arith.constant 0 : index
    %c0_0 = arith.constant 0 : index
    %c0_1 = arith.constant 0 : index
    %0 = vector.load %arg3[%c0, %c0_0, %c0_1] : memref<1x128x48xbf16, #tpu.memory_space<vmem>>, vector<1x128x48xbf16>
    %1 = vector.shape_cast %0 : vector<1x128x48xbf16> to vector<128x48xbf16>
    %c0_2 = arith.constant 0 : index
    %c0_3 = arith.constant 0 : index
    %c0_4 = arith.constant 0 : index
    %2 = vector.load %arg4[%c0_2, %c0_3, %c0_4] : memref<1x48x256xbf16, #tpu.memory_space<vmem>>, vector<1x48x256xbf16>
    %3 = vector.shape_cast %2 : vector<1x48x256xbf16> to vector<48x256xbf16>
    %cst = arith.constant dense<0.000000e+00> : vector<128x256xf32>
    %4 = tpu.matmul %1, %3, %cst {dimension_numbers = #tpu.dot_dimension_numbers<[1], [0], [0], [1], [0, 0, 1, 1], [], []>} : vector<128x48xbf16>, vector<48x256xbf16>, vector<128x256xf32> -> vector<128x256xf32>
    %c0_5 = arith.constant 0 : index
    %c0_6 = arith.constant 0 : index
    %c0_7 = arith.constant 0 : index
    %5 = vector.load %arg5[%c0_5, %c0_6, %c0_7] : memref<1x128x1xf32, #tpu.memory_space<vmem>>, vector<1x128x1xf32>
    %6 = vector.shape_cast %5 : vector<1x128x1xf32> to vector<128x1xf32>
    %c0_8 = arith.constant 0 : index
    %c0_9 = arith.constant 0 : index
    %c0_10 = arith.constant 0 : index
    %7 = vector.load %arg6[%c0_8, %c0_9, %c0_10] : memref<1x1x256xf32, #tpu.memory_space<vmem>>, vector<1x1x256xf32>
    %8 = vector.shape_cast %7 : vector<1x1x256xf32> to vector<1x256xf32>
    %9 = vector.broadcast %6 : vector<128x1xf32> to vector<128x256xf32>
    %10 = vector.broadcast %8 : vector<1x256xf32> to vector<128x256xf32>
    %11 = arith.mulf %9, %10 : vector<128x256xf32>
    %cst_11 = arith.constant 1.000000e-03 : f32
    %12 = vector.broadcast %cst_11 : f32 to vector<128x256xf32>
    %13 = arith.addf %11, %12 : vector<128x256xf32>
    %14 = tpu.reciprocal %13 {approx = true} : vector<128x256xf32> -> vector<128x256xf32>
    %15 = arith.mulf %4, %14 : vector<128x256xf32>
    %cst_12 = arith.constant 0.000000e+00 : f32
    %16 = vector.broadcast %cst_12 : f32 to vector<128x256xf32>
    %17 = arith.maximumf %15, %16 : vector<128x256xf32>
    %18 = arith.mulf %17, %17 : vector<128x256xf32>
    %c0_13 = arith.constant 0 : index
    %c0_14 = arith.constant 0 : index
    %c0_15 = arith.constant 0 : index
    %19 = vector.load %arg7[%c0_13, %c0_14, %c0_15] : memref<1x128x256xf32, #tpu.memory_space<vmem>>, vector<1x128x256xf32>
    %20 = vector.shape_cast %19 : vector<1x128x256xf32> to vector<128x256xf32>
    %21 = vector.shape_cast %18 : vector<128x256xf32> to vector<1x128x256xf32>
    tpu.vector_store %arg7[%c0_13, %c0_14, %c0_15], %21 {strides = array<i32>} : memref<1x128x256xf32, #tpu.memory_space<vmem>>, vector<1x128x256xf32>,
    return
  }
  func.func @transform_0(%arg0: i32, %arg1: i32, %arg2: i32) -> (i32, i32, i32) {
    %c0_i32 = arith.constant 0 : i32
    %c0_i32_0 = arith.constant 0 : i32
    return %arg0, %arg1, %c0_i32 : i32, i32, i32
  }
  func.func @transform_1(%arg0: i32, %arg1: i32, %arg2: i32) -> (i32, i32, i32) {
    %c0_i32 = arith.constant 0 : i32
    %c0_i32_0 = arith.constant 0 : i32
    return %arg0, %c0_i32, %arg2 : i32, i32, i32
  }
  func.func @transform_2(%arg0: i32, %arg1: i32, %arg2: i32) -> (i32, i32, i32) {
    %c0_i32 = arith.constant 0 : i32
    %c0_i32_0 = arith.constant 0 : i32
    return %arg0, %arg1, %c0_i32 : i32, i32, i32
  }
  func.func @transform_3(%arg0: i32, %arg1: i32, %arg2: i32) -> (i32, i32, i32) {
    %c0_i32 = arith.constant 0 : i32
    %c0_i32_0 = arith.constant 0 : i32
    return %arg0, %c0_i32, %arg2 : i32, i32, i32
  }
  func.func @transform_4(%arg0: i32, %arg1: i32, %arg2: i32) -> (i32, i32, i32) {
    %c0_i32 = arith.constant 0 : i32
    return %arg0, %arg1, %arg2 : i32, i32, i32
  }
}

</mosaic_0001>

<bundles_post_ra>
// kernel: tpu_custom_call.1
= control target key start
LH: loop header
LB: loop body
LE: loop exit
PB: predicated region body
PF: predicated region fallthrough
CT: control target
= control target key end

     0   :  { %9 = vsyncpa [#allocation3], 0  ;;  %s1708_s0 = inlined_call_operand.vmem [shape: bf16[2,256,48], index: 0, kind: input, shape index: {}]   ;;  %s1709_s1 = inlined_call_operand.vmem [shape: bf16[2,48,256], index: 1, kind: input, shape index: {}]   ;;  %s1710_s2 = inlined_call_operand.vmem [shape: f32[2,256,1], index: 2, kind: input, shape index: {}]   ;;  %s1711_s3 = inlined_call_operand.vmem [shape: f32[2,1,256], index: 3, kind: input, shape index: {}]   ;;  %s1712_s4 = inlined_call_operand.hbm [shape: f32[2,256,256], index: 4, kind: output, shape index: {}]  }
   0x1   :  { %11 = vsyncpa [#allocation3 + $0x1], 0  ;;  %s1393_s15 = smov 0   ;;  %s1395_s16 = smov 0  }
   0x2   :  { %s1397_s17 = smov 0   ;;  %s1399_s18 = smov 0  }
   0x3   :  { %s1401_s19 = smov 0   ;;  %s1403_s20 = smov 0  }
   0x4   :  { %s1405_s21 = smov 0   ;;  %s1407_s22 = smov 0  }
   0x5 LB: > { %s1062_s23 = sadd.s32 4294967295, %s1362_s22   ;;  %s1063_s24 = sadd.s32 4294967294, %s1362_s22   ;;  %s1362_s22 = sphi %s1407_s22, %s17_s22   ;;  %s1358_s21 = sphi %s1405_s21, %s1721_s21   ;;  %s1354_s20 = sphi %s1403_s20, %s1720_s20   ;;  %s1350_s19 = sphi %s1401_s19, %s1719_s19   ;;  %s1346_s18 = sphi %s1399_s18, %s1718_s18   ;;  %s1342_s17 = sphi %s1397_s17, %s1717_s17   ;;  %s1338_s16 = sphi %s1395_s16, %s1716_s16   ;;  %s1334_s15 = sphi %s1393_s15, %s1715_s15  }
   0x6   : > { %s32_s25 = sadd.s32 1, %s1354_s20  ;;  %s36_s26 = sadd.s32 1, %s1358_s21 }
   0x7   : > { %p34_p0 = scmp.ge.s32.totalorder %s32_s25, 2  ;;  %p169_p1 = scmp.ne.s32.totalorder %s1342_s17, %s1338_s16 }
   0x8   : > { %p170_p2 = scmp.eq.s32.totalorder %s1062_s23, 3  ;;  %p175_p5 = scmp.ne.s32.totalorder %s1338_s16, %s1334_s15 }
   0x9   : > { %s1723_s25 = smov (%p34_p0, %s32_s25), 0  ;;  %s1725_s26 = smov (!%p34_p0, %s36_s26), %s1358_s21 }
   0xa   : > { %s153_s27 = ssub.s32 %s1354_s20, %s1723_s25  ;;  %p1444_p3 = por %p170_p2, %p169_p1 }
   0xb   : > { %p38_p4 = scmp.ge.s32.totalorder %s1725_s26, 2  ;;  %p176_p6 = scmp.eq.s32.totalorder %s1063_s24, 3 }
   0xc   : > { %p1066_p7 = scmp.ge.s32.totalorder %s1362_s22, 1  ;;  %p245_p9 = scmp.lt.s32.totalorder %s1362_s22, 5 }
   0xd   : > { %s1727_s26 = smov (%p38_p4, %s1725_s26), 0  ;;  %p1453_p8 = por %p176_p6, %p175_p5 }
   0xe   : > { %s152_s30 = ssub.s32 %s1358_s21, %s1727_s26  ;;  %s159_s5 = sadd.s32 1, %s1342_s17 }
   0xf   : > { %s154_s6 = sor.u32 %s153_s27, %s152_s30  ;;  %p246_p10 = pnand %p1066_p7, %p245_p9 }
  0x10   : > { %p157_p11 = scmp.eq.s32.totalorder %s154_s6, 0  ;;  %s1068_s8 = sshll.u32 (!%p246_p10), %s1346_s18, 4 }
  0x11   : > { %249 = sbr.rel (%p246_p10) target bundleno = 284 (0x11c), region = 36  ;;  %p302_p12 = scmp.lt.s32.totalorder (!%p246_p10), %s1350_s19, 1 }
  0x12   : > { %s1462_s7 = scalar_select %p157_p11, %s1342_s17, %s159_s5  }
  0x13   : > { %p304_p13 = scmp.lt.s32.totalorder (!%p246_p10), %s1068_s8, 31  ;;  %s1105_s30 = sshll.u32 (!%p246_p10), %s1346_s18, 5 }
  0x14   : > { %s1365_s14 = smov (!%p246_p10), [#allocation2]  }
  0x16   : > { %v1364_v0 = vmov 0   ;;  %s1469_s9 = scalar_select %p302_p12, %s1350_s19, 1  ;;  %vm435_vm0 = vcmask 392192   ;;  %v671_v32 = vlaneseq }
  0x17   : > { %492 = vmatprep.mubr.bf16.mxu0 %v1364_v0  ;;  %532 = vmatprep.mubr.bf16.mxu1 %v1364_v0  ;;  %s1729_s8 = smov (!%p304_p13, %s1068_s8), 31 }
  0x18   : > { %1188 = vset.pattern.permute.xlu1 %v1364_v0  ;;  %1187 = vset.pattern.permute.xlu0 %v1364_v0  ;;  %s1069_s10 = sshll.u32 %s1469_s9, 5  ;;  %s1112_s11 = smul.u32 48, %s1469_s9  ;;  %v672_v35 = vshrl.u32 %v671_v32, 7 }
  0x19   : > { %s307_s12 = sadd.s32 %s1069_s10, %s1729_s8 }
  0x1a   : > { %s319_s23 = scalar_lea.vmem %s1709_s1, %s1112_s11  ;;  %s1070_s24 = sshll.u32 %s307_s12, 2  ;;  %v677_v36 = vsub.s32 1, %v672_v35  ;;  %v673_v38 = vsub.s32 0, %v672_v35 }
  0x1b   : > { %v1189_v1 = vld [vmem:[%s319_s23 + $0x24] ss:$8 sps:$4 sm:$0xff]   ;;  %v1191_v2 = vld [vmem:[%s319_s23 + $0x20] ss:$8 sps:$4 sm:$0xff]   ;;  %v1192_v3 = vld [vmem:[%s319_s23 + $0x14] ss:$8 sps:$4 sm:$0xff]   ;;  %s1481_s5 = scalar_lea.vmem %s1708_s0, %s1070_s24 }
  0x1c   : > { %470 = vmatprep.subr.bf16.mxu0 %v1189_v1  ;;  %1106 = vmatprep.subr.bf16.mxu1 %v1189_v1  ;;  %v1194_v4 = vld [vmem:[%s319_s23 + $0x10] ss:$8 sps:$4 sm:$0xff]   ;;  %v1195_v5 = vld [vmem:[%s319_s23 + $0x4] ss:$8 sps:$4 sm:$0xff]   ;;  %s1074_s6 = sshll.u32 %s307_s12, 3  ;;  %s1075_s12 = sshll.u32 %s1469_s9, 1 }
  0x1d   : > { %471 = vmatpush1.bf16.msra.mxu0 %v1191_v2  ;;  %1109 = vmatpush1.bf16.msra.mxu1 %v1191_v2  ;;  %v1197_v6 = vld [vmem:[%s319_s23] ss:$8 sps:$4 sm:$0xff]   ;;  %s1486_s11 = scalar_lea.vmem %s1710_s2, %s1074_s6  ;;  %v1202_v19 = vld [vmem:[%s1481_s5 + $0x10] sm:$0xff]   ;;  %v1204_v25 = vld [vmem:[%s1481_s5 + $0x18] sm:$0xff]   ;;  %s338_s23 = scalar_lea.vmem %s1711_s3, %s1075_s12 }
  0x1e   : > { %472 = vmatprep.subr.bf16.mxu0 %v1192_v3  ;;  %1107 = vmatprep.subr.bf16.mxu1 %v1192_v3  ;;  %v1198_v7 = vld [vmem:[%s1481_s5] sm:$0xff]   ;;  %v575_v9 = vld [vmem:[%s1486_s11 + $0x10] sm:$0xff]  ;;  %v576_v11 = vld [vmem:[%s1486_s11 + $0x18] sm:$0xff]  ;;  %s298_s9 = sand.u32 1, %s1338_s16  }
  0x1f   : > { %v1199_v8 = vld [vmem:[%s1481_s5 + $0x20] sm:$0xff]   ;;  %602 = vperm.xlu1 %1188, %v575_v9   ;;  %v574_v12 = vld [vmem:[%s1486_s11 + $0x8] sm:$0xff]  ;;  %v580_v17 = vld [vmem:[%s1486_s11 + $0x38] sm:$0xff]  ;;  %s1577_s24 = sshll.u32 %s298_s9, 8  ;;  %s1657_s12 = scalar_lea.sflag [#allocation3], %s298_s9 }
  0x20   : > { %v573_v10 = vld [vmem:[%s1486_s11] sm:$0xff]  ;;  %v1200_v13 = vld [vmem:[%s1481_s5 + $0x8] sm:$0xff]   ;;  %v579_v18 = vld [vmem:[%s1486_s11 + $0x30] sm:$0xff]  ;;  %s1592_s27 = scalar_lea.vmem [#allocation2], %s1577_s24 }
  0x21   : > { %473 = vmatpush1.bf16.msra.mxu0 %v1194_v4  ;;  %1110 = vmatpush1.bf16.msra.mxu1 %v1194_v4  ;;  %v1201_v14 = vld [vmem:[%s1481_s5 + $0x28] sm:$0xff]   ;;  %v577_v16 = vld [vmem:[%s1486_s11 + $0x20] sm:$0xff]  ;;  %v1203_v20 = vld [vmem:[%s1481_s5 + $0x30] sm:$0xff]   ;;  %s924_s6 = sshll.u32 %s1592_s27, 4  ;;  %s1649_s6 = int_to_ptr.vmem [resolvable:$true] %s924_s6 }
  0x22   : > { %474 = vmatprep.subr.bf16.mxu0 %v1195_v5  ;;  %1108 = vmatprep.subr.bf16.mxu1 %v1195_v5  ;;  %v578_v15 = vld [vmem:[%s1486_s11 + $0x28] sm:$0xff]  ;;  %v581_v22 = vld [vmem:[%s1486_s11 + $0x40] sm:$0xff]  ;;  %v584_v23 = vld [vmem:[%s1486_s11 + $0x58] sm:$0xff]  ;;  %s1270_s13 = scalar_lea.vmem %s1649_s6, 4096 }
  0x23   : > { %592 = vperm.xlu0 %1187, %v573_v10   ;;  %607 = vperm.xlu1 %1188, %v576_v11   ;;  %v582_v21 = vld [vmem:[%s1486_s11 + $0x48] sm:$0xff]  ;;  %v583_v24 = vld [vmem:[%s1486_s11 + $0x50] sm:$0xff]  ;;  %v1205_v26 = vld [vmem:[%s1481_s5 + $0x38] sm:$0xff]   ;;  %s1101_s5 = sshll.u32 %s1350_s19, 6  ;;  %p1271_p0 = scmp.ne.s32.totalorder %s1649_s6, %s1270_s13 }
  0x24   : > { %v586_v27 = vld [vmem:[%s1486_s11 + $0x68] sm:$0xff]  ;;  %v585_v28 = vld [vmem:[%s1486_s11 + $0x60] sm:$0xff]  ;;  %v588_v29 = vld [vmem:[%s1486_s11 + $0x78] sm:$0xff]  ;;  %s1632_s18 = sadd.s32 %s1105_s30, %s1101_s5 }
  0x25   : > { %475 = vmatpush1.bf16.msra.mxu0 %v1197_v6  ;;  %1111 = vmatpush1.bf16.msra.mxu1 %v1197_v6  ;;  %v587_v30 = vld [vmem:[%s1486_s11 + $0x70] sm:$0xff]  ;;  %v589_v39 = vld [vmem:[%s338_s23] sm:$0x3]  ;;  %s1102_s19 = sshll.u32 %s1632_s18, 7  ;;  %p1272_p1 = pnand %p1271_p0, %p1444_p3 }
  0x26   : > { %v1530_v41 = vrot.slane %v589_v39, %v677_v36  ;;  %v1532_v42 = vrot.slane %v589_v39, %v673_v38  ;;  %s1647_s11 = scalar_lea.hbm %s1712_s4, %s1102_s19  ;;  %s1274_s23 = sshll.u32 %s1365_s14, 4  ;;  %s1275_s23 = int_to_ptr.vmem [resolvable:$false] %s1274_s23 }
  0x27   : > { %597 = vperm.xlu0 %1187, %v574_v12   ;;  %617 = vperm.xlu1 %1188, %v578_v15   ;;  %p1273_p2 = pneg %p1272_p1  ;;  %s1276_s24 = scalar_lea.vmem %s1275_s23, 8192 }
  0x28   : > { %1090 = vmatmul.mubr.msk.bf16.vlgmr.msra.gmra.mxu0 %vm435_vm0, %v1198_v7  ;;  %1094 = vmatmul.mubr.msk.bf16.vlgmr.msra.gmra.mxu1 %vm435_vm0, %v1199_v8  ;;  %p1277_p4 = scmp.lt.s32.totalorder %s1649_s6, %s1275_s23  ;;  %p1278_p5 = scmp.lt.s32.totalorder %s1276_s24, %s1270_s13 }
  0x29   : > { %502 = vmatprep.mubr.bf16.mxu0 %v1364_v0  ;;  %542 = vmatprep.mubr.bf16.mxu1 %v1364_v0 }
  0x2a   : > { %p1279_p6 = por %p1278_p5, %p1277_p4 }
  0x2b   : > { %612 = vperm.xlu0 %1187, %v577_v16   ;;  %627 = vperm.xlu1 %1188, %v580_v17  }
  0x2c   : > { %p1280_p7 = pnand %p1279_p6, %p1273_p2 }
  0x2f   : > { %622 = vperm.xlu0 %1187, %v579_v18   ;;  %637 = vperm.xlu1 %1188, %v582_v21  }
  0x30   : > { %1091 = vmatmul.mubr.msk.bf16.gmra.mxu0 %vm435_vm0, %v1200_v13  ;;  %1095 = vmatmul.mubr.msk.bf16.gmra.mxu1 %vm435_vm0, %v1201_v14 }
  0x31   : > { %512 = vmatprep.mubr.bf16.mxu0 %v1364_v0  ;;  %552 = vmatprep.mubr.bf16.mxu1 %v1364_v0 }
  0x33   : > { %632 = vperm.xlu0 %1187, %v581_v22   ;;  %647 = vperm.xlu1 %1188, %v584_v23  }
  0x37   : > { %642 = vperm.xlu0 %1187, %v583_v24   ;;  %657 = vperm.xlu1 %1188, %v586_v27  }
  0x38   : > { %1092 = vmatmul.mubr.msk.bf16.gmra.mxu0 %vm435_vm0, %v1202_v19  ;;  %1096 = vmatmul.mubr.msk.bf16.gmra.mxu1 %vm435_vm0, %v1203_v20 }
  0x39   : > { %522 = vmatprep.mubr.bf16.mxu0 %v1364_v0  ;;  %562 = vmatprep.mubr.bf16.mxu1 %v1364_v0 }
  0x3b   : > { %652 = vperm.xlu0 %1187, %v585_v28   ;;  %667 = vperm.xlu1 %1188, %v588_v29  }
  0x3f   : > { %662 = vperm.xlu0 %1187, %v587_v30  }
  0x40   : > { %1093 = vmatmul.mubr.msk.bf16.gmra.mxu0 %vm435_vm0, %v1204_v25  ;;  %1097 = vmatmul.mubr.msk.bf16.gmra.mxu1 %vm435_vm0, %v1205_v26 }
  0x9a   : > { %v603_v33 = vpop.permute.xlu1 %602 }
  0x9b   : > { %v685_v44 = vmul.f32 %v1532_v42, %v603_v33  ;;  %v686_v45 = vmul.f32 %v1530_v41, %v603_v33 }
  0x9d   : > { %v717_v49 = vadd.f32 0.001, %v685_v44  ;;  %v718_v51 = vadd.f32 0.001, %v686_v45 }
  0x9e   : > { %v593_v31 = vpop.permute.xlu0 %592  ;;  %v608_v37 = vpop.permute.xlu1 %607 }
  0x9f   : > { %v681_v47 = vmul.f32 %v1532_v42, %v593_v31  ;;  %v682_v48 = vmul.f32 %v1530_v41, %v593_v31  ;;  %v687_v50 = vmul.f32 %v1532_v42, %v608_v37  ;;  %v688_v52 = vmul.f32 %v1530_v41, %v608_v37 }
  0xa0   : > { %1206 = vrcp.f32 %v717_v49 }
  0xa1   : > { %v713_v54 = vadd.f32 0.001, %v681_v47  ;;  %v714_v56 = vadd.f32 0.001, %v682_v48  ;;  %v719_v59 = vadd.f32 0.001, %v687_v50  ;;  %1208 = vrcp.f32 %v718_v51 }
  0xa2   : > { %v598_v34 = vpop.permute.xlu0 %597  ;;  %v618_v43 = vpop.permute.xlu1 %617  ;;  %v720_v61 = vadd.f32 0.001, %v688_v52 }
  0xa3   : > { %v683_v55 = vmul.f32 %v1532_v42, %v598_v34  ;;  %v684_v57 = vmul.f32 %v1530_v41, %v598_v34  ;;  %v691_v62 = vmul.f32 %v1532_v42, %v618_v43  ;;  %1210 = vrcp.f32 %v713_v54 }
  0xa4   : > { %1212 = vrcp.f32 %v714_v56  ;;  %v692_v2 = vmul.f32 %v1530_v41, %v618_v43 }
  0xa5   : > { %v715_v63 = vadd.f32 0.001, %v683_v55  ;;  %v716_v1 = vadd.f32 0.001, %v684_v57  ;;  %1214 = vrcp.f32 %v719_v59  ;;  %v723_v6 = vadd.f32 0.001, %v691_v62 }
  0xa6   : > { %v613_v40 = vpop.permute.xlu0 %612  ;;  %v628_v53 = vpop.permute.xlu1 %627  ;;  %1216 = vrcp.f32 %v720_v61  ;;  %v724_v10 = vadd.f32 0.001, %v692_v2 }
  0xa7   : > { %v689_v4 = vmul.f32 %v1532_v42, %v613_v40  ;;  %v690_v7 = vmul.f32 %v1530_v41, %v613_v40  ;;  %1218 = vrcp.f32 %v715_v63  ;;  %v695_v8 = vmul.f32 %v1532_v42, %v628_v53 }
  0xa8   : > { %1220 = vrcp.f32 %v716_v1  ;;  %v696_v15 = vmul.f32 %v1530_v41, %v628_v53 }
  0xa9   : > { %v721_v12 = vadd.f32 0.001, %v689_v4  ;;  %v722_v14 = vadd.f32 0.001, %v690_v7  ;;  %v727_v18 = vadd.f32 0.001, %v695_v8 }
  0xaa   : > { %v623_v46 = vpop.permute.xlu0 %622  ;;  %v638_v3 = vpop.permute.xlu1 %637  ;;  %v728_v25 = vadd.f32 0.001, %v696_v15 }
  0xab   : > { %v699_v11 = vmul.f32 %v1532_v42, %v638_v3  ;;  %v700_v13 = vmul.f32 %v1530_v41, %v638_v3  ;;  %v693_v20 = vmul.f32 %v1532_v42, %v623_v46  ;;  %v694_v22 = vmul.f32 %v1530_v41, %v623_v46 }
  0xad   : > { %v731_v21 = vadd.f32 0.001, %v699_v11  ;;  %v732_v23 = vadd.f32 0.001, %v700_v13  ;;  %v1555_v24 = vpop.eup %1206  ;;  %v725_v31 = vadd.f32 0.001, %v693_v20 }
  0xae   : > { %v633_v58 = vpop.permute.xlu0 %632  ;;  %v648_v16 = vpop.permute.xlu1 %647  ;;  %v726_v35 = vadd.f32 0.001, %v694_v22 }
  0xaf   : > { %v697_v60 = vmul.f32 %v1532_v42, %v633_v58  ;;  %v698_v0 = vmul.f32 %v1530_v41, %v633_v58  ;;  %v1558_v27 = vpop.eup %1208  ;;  %v703_v28 = vmul.f32 %v1532_v42, %v648_v16  ;;  %v704_v32 = vmul.f32 %v1530_v41, %v648_v16 }
  0xb0   : > { %v1211_v30 = vpop.eup %1210 }
  0xb1   : > { %v729_v5 = vadd.f32 0.001, %v697_v60  ;;  %v730_v9 = vadd.f32 0.001, %v698_v0  ;;  %v1213_v34 = vpop.eup %1212  ;;  %v735_v44 = vadd.f32 0.001, %v703_v28 }
  0xb2   : > { %v643_v17 = vpop.permute.xlu0 %642  ;;  %v658_v33 = vpop.permute.xlu1 %657  ;;  %v736_v46 = vadd.f32 0.001, %v704_v32 }
  0xb3   : > { %1222 = vrcp.f32 %v729_v5  ;;  %v701_v19 = vmul.f32 %v1532_v42, %v643_v17  ;;  %v702_v26 = vmul.f32 %v1530_v41, %v643_v17  ;;  %v707_v36 = vmul.f32 %v1532_v42, %v658_v33  ;;  %v1563_v38 = vpop.eup %1214 }
  0xb4   : > { %1224 = vrcp.f32 %v723_v6  ;;  %v1566_v43 = vpop.eup %1216  ;;  %v708_v55 = vmul.f32 %v1530_v41, %v658_v33 }
  0xb5   : > { %1226 = vrcp.f32 %v730_v9  ;;  %v733_v29 = vadd.f32 0.001, %v701_v19  ;;  %v734_v39 = vadd.f32 0.001, %v702_v26  ;;  %v1219_v45 = vpop.eup %1218  ;;  %v739_v49 = vadd.f32 0.001, %v707_v36 }
  0xb6   : > { %1228 = vrcp.f32 %v724_v10  ;;  %v653_v37 = vpop.permute.xlu0 %652  ;;  %v1221_v48 = vpop.eup %1220  ;;  %v740_v9 = vadd.f32 0.001, %v708_v55 }
  0xb7   : > { %1230 = vrcp.f32 %v721_v12  ;;  %v705_v40 = vmul.f32 %v1532_v42, %v653_v37  ;;  %v706_v47 = vmul.f32 %v1530_v41, %v653_v37  ;;  %v668_v60 = vpop.permute.xlu1 %667 }
  0xb8   : > { %1232 = vrcp.f32 %v722_v14  ;;  %v711_v10 = vmul.f32 %v1532_v42, %v668_v60  ;;  %v712_v20 = vmul.f32 %v1530_v41, %v668_v60 }
  0xb9   : > { %1234 = vrcp.f32 %v727_v18  ;;  %v737_v51 = vadd.f32 0.001, %v705_v40  ;;  %v738_v56 = vadd.f32 0.001, %v706_v47 }
  0xba   : > { %1236 = vrcp.f32 %v731_v21  ;;  %v663_v53 = vpop.permute.xlu0 %662  ;;  %v743_v47 = vadd.f32 0.001, %v711_v10 }
  0xbb   : > { %1238 = vrcp.f32 %v732_v23  ;;  %v709_v0 = vmul.f32 %v1532_v42, %v663_v53  ;;  %v710_v11 = vmul.f32 %v1530_v41, %v663_v53 }
  0xbc   : > { %1240 = vrcp.f32 %v728_v25 }
  0xbd   : > { %1242 = vrcp.f32 %v733_v29  ;;  %v741_v21 = vadd.f32 0.001, %v709_v0  ;;  %v742_v32 = vadd.f32 0.001, %v710_v11 }
  0xbe   : > { %1244 = vrcp.f32 %v725_v31 }
  0xbf   : > { %1246 = vrcp.f32 %v726_v35 }
  0xc0   : > { %v1223_v50 = vpop.eup %1222  ;;  %1248 = vrcp.f32 %v734_v39 }
  0xc1   : > { %v1570_v52 = vpop.eup %1224  ;;  %1250 = vrcp.f32 %v735_v44 }
  0xc2   : > { %v1227_v54 = vpop.eup %1226  ;;  %1252 = vrcp.f32 %v736_v46 }
  0xc3   : > { %v1573_v59 = vpop.eup %1228  ;;  %1254 = vrcp.f32 %v739_v49 }
  0xc4   : > { %v1579_v63 = vpop.eup %1230  ;;  %1256 = vrcp.f32 %v737_v51 }
  0xc5   : > { %v1582_v3 = vpop.eup %1232  ;;  %1258 = vrcp.f32 %v738_v56 }
  0xc6   : > { %v1584_v8 = vpop.eup %1234  ;;  %1260 = vrcp.f32 %v740_v9 }
  0xc7   : > { %v1237_v14 = vpop.eup %1236  ;;  %1262 = vrcp.f32 %v741_v21 }
  0xc8   : > { %v1239_v19 = vpop.eup %1238  ;;  %1264 = vrcp.f32 %v742_v32 }
  0xc9   : > { %v1589_v28 = vpop.eup %1240  ;;  %1266 = vrcp.f32 %v743_v47 }
  0xca   : > { %v1243_v41 = vpop.eup %1242 }
  0xcb   : > { %v1596_v37 = vpop.eup %1244 }
  0xcc   : > { %v1601_v46 = vpop.eup %1246 }
  0xcd   : > { %v1249_v53 = vpop.eup %1248 }
  0xe8   : > { %v494_v57 = vpop.f32.mrf.mxu0  ;;  %v534_v58 = vpop.f32.mrf.mxu1 }
  0xe9   : > { %v777_v61 = vmul.f32 %v1211_v30, %v494_v57  ;;  %v793_v62 = vmul.f32 %v1223_v50, %v534_v58  ;;  %v1251_v58 = vpop.eup %1250 }
  0xea   : > { %v496_v1 = vpop.f32.mrf.mxu0  ;;  %v536_v2 = vpop.f32.mrf.mxu1 }
  0xeb   : > { %v809_v4 = vmax.f32 %v777_v61, 0.0  ;;  %v825_v5 = vmax.f32 %v793_v62, 0.0  ;;  %v778_v6 = vmul.f32 %v1213_v34, %v496_v1  ;;  %v794_v7 = vmul.f32 %v1227_v54, %v536_v2  ;;  %v1253_v1 = vpop.eup %1252 }
  0xec   : > { %v498_v12 = vpop.f32.mrf.mxu0  ;;  %v538_v13 = vpop.f32.mrf.mxu1 }
  0xed   : > { %v841_v15 = vmul.f32 %v809_v4, %v809_v4  ;;  %v857_v16 = vmul.f32 %v825_v5, %v825_v5  ;;  %v810_v17 = vmax.f32 %v778_v6, 0.0  ;;  %v826_v18 = vmax.f32 %v794_v7, 0.0  ;;  %v1255_v7 = vpop.eup %1254 }
  0xee   : > { %v779_v22 = vmul.f32 %v1219_v45, %v498_v12  ;;  %v795_v23 = vmul.f32 %v1237_v14, %v538_v13  ;;  %v500_v25 = vpop.f32.mrf.mxu0  ;;  %v540_v26 = vpop.f32.mrf.mxu1 }
  0xef   : > { %873 = vst [vmem:[%s1592_s27] sm:$0xff] %v841_v15  ;;  %889 = vst [vmem:[%s1592_s27 + $0x80] sm:$0xff] %v857_v16  ;;  %v842_v42 = vmul.f32 %v810_v17, %v810_v17  ;;  %v858_v29 = vmul.f32 %v826_v18, %v826_v18  ;;  %v780_v30 = vmul.f32 %v1221_v48, %v500_v25 }
  0xf0   : > { %v796_v31 = vmul.f32 %v1239_v19, %v540_v26  ;;  %v811_v33 = vmax.f32 %v779_v22, 0.0  ;;  %v827_v34 = vmax.f32 %v795_v23, 0.0  ;;  %v504_v35 = vpop.f32.mrf.mxu0  ;;  %v544_v36 = vpop.f32.mrf.mxu1 }
  0xf1   : > { %874 = vst [vmem:[%s1592_s27 + $0x8] sm:$0xff] %v842_v42  ;;  %890 = vst [vmem:[%s1592_s27 + $0x88] sm:$0xff] %v858_v29  ;;  %v812_v39 = vmax.f32 %v780_v30, 0.0  ;;  %v781_v44 = vmul.f32 %v1555_v24, %v504_v35  ;;  %v797_v45 = vmul.f32 %v1243_v41, %v544_v36  ;;  %v744_v24 = vadd.f32 0.001, %v712_v20 }
  0xf2   : > { %v828_v40 = vmax.f32 %v796_v31, 0.0  ;;  %v843_v48 = vmul.f32 %v811_v33, %v811_v33  ;;  %v859_v49 = vmul.f32 %v827_v34, %v827_v34  ;;  %v506_v50 = vpop.f32.mrf.mxu0  ;;  %v546_v51 = vpop.f32.mrf.mxu1 }
  0xf3   : > { %v844_v54 = vmul.f32 %v812_v39, %v812_v39  ;;  %v813_v56 = vmax.f32 %v781_v44, 0.0  ;;  %v829_v57 = vmax.f32 %v797_v45, 0.0  ;;  %v782_v60 = vmul.f32 %v1558_v27, %v506_v50  ;;  %v1257_v27 = vpop.eup %1256 }
  0xf4   : > { %v860_v55 = vmul.f32 %v828_v40, %v828_v40  ;;  %875 = vst [vmem:[%s1592_s27 + $0x10] sm:$0xff] %v843_v48  ;;  %891 = vst [vmem:[%s1592_s27 + $0x90] sm:$0xff] %v859_v49  ;;  %v798_v61 = vmul.f32 %v1249_v53, %v546_v51  ;;  %v508_v62 = vpop.f32.mrf.mxu0  ;;  %v548_v0 = vpop.f32.mrf.mxu1  ;;  %1268 = vrcp.f32 %v744_v24 }
  0xf5   : > { %876 = vst [vmem:[%s1592_s27 + $0x18] sm:$0xff] %v844_v54  ;;  %v845_v2 = vmul.f32 %v813_v56, %v813_v56  ;;  %v861_v4 = vmul.f32 %v829_v57, %v829_v57  ;;  %v783_v5 = vmul.f32 %v1563_v38, %v508_v62  ;;  %v799_v6 = vmul.f32 %v1251_v58, %v548_v0  ;;  %v1259_v20 = vpop.eup %1258 }
  0xf6   : > { %892 = vst [vmem:[%s1592_s27 + $0x98] sm:$0xff] %v860_v55  ;;  %v814_v9 = vmax.f32 %v782_v60, 0.0  ;;  %v830_v10 = vmax.f32 %v798_v61, 0.0  ;;  %v510_v11 = vpop.f32.mrf.mxu0  ;;  %v550_v12 = vpop.f32.mrf.mxu1 }
  0xf7   : > { %877 = vst [vmem:[%s1592_s27 + $0x20] sm:$0xff] %v845_v2  ;;  %893 = vst [vmem:[%s1592_s27 + $0xa0] sm:$0xff] %v861_v4  ;;  %v815_v13 = vmax.f32 %v783_v5, 0.0  ;;  %v831_v14 = vmax.f32 %v799_v6, 0.0  ;;  %v784_v15 = vmul.f32 %v1566_v43, %v510_v11  ;;  %v800_v16 = vmul.f32 %v1253_v1, %v550_v12  ;;  %v1261_v39 = vpop.eup %1260 }
  0xf8   : > { %v846_v38 = vmul.f32 %v814_v9, %v814_v9  ;;  %v862_v17 = vmul.f32 %v830_v10, %v830_v10  ;;  %v514_v18 = vpop.f32.mrf.mxu0  ;;  %v554_v19 = vpop.f32.mrf.mxu1 }
  0xf9   : > { %v847_v21 = vmul.f32 %v815_v13, %v815_v13  ;;  %v863_v22 = vmul.f32 %v831_v14, %v831_v14  ;;  %v816_v23 = vmax.f32 %v784_v15, 0.0  ;;  %v832_v25 = vmax.f32 %v800_v16, 0.0  ;;  %v1263_v50 = vpop.eup %1262 }
  0xfa   : > { %878 = vst [vmem:[%s1592_s27 + $0x28] sm:$0xff] %v846_v38  ;;  %894 = vst [vmem:[%s1592_s27 + $0xa8] sm:$0xff] %v862_v17  ;;  %v785_v26 = vmul.f32 %v1579_v63, %v514_v18  ;;  %v801_v43 = vmul.f32 %v1257_v27, %v554_v19  ;;  %v516_v42 = vpop.f32.mrf.mxu0  ;;  %v556_v29 = vpop.f32.mrf.mxu1 }
  0xfb   : > { %879 = vst [vmem:[%s1592_s27 + $0x30] sm:$0xff] %v847_v21  ;;  %895 = vst [vmem:[%s1592_s27 + $0xb0] sm:$0xff] %v863_v22  ;;  %v848_v30 = vmul.f32 %v816_v23, %v816_v23  ;;  %v864_v31 = vmul.f32 %v832_v25, %v832_v25  ;;  %v786_v41 = vmul.f32 %v1582_v3, %v516_v42  ;;  %v1265_v24 = vpop.eup %1264 }
  0xfc   : > { %v802_v32 = vmul.f32 %v1259_v20, %v556_v29  ;;  %v817_v33 = vmax.f32 %v785_v26, 0.0  ;;  %v833_v34 = vmax.f32 %v801_v43, 0.0  ;;  %v518_v35 = vpop.f32.mrf.mxu0  ;;  %v558_v36 = vpop.f32.mrf.mxu1 }
  0xfd   : > { %880 = vst [vmem:[%s1592_s27 + $0x38] sm:$0xff] %v848_v30  ;;  %896 = vst [vmem:[%s1592_s27 + $0xb8] sm:$0xff] %v864_v31  ;;  %v818_v63 = vmax.f32 %v786_v41, 0.0  ;;  %v787_v44 = vmul.f32 %v1570_v52, %v518_v35  ;;  %v803_v45 = vmul.f32 %v1255_v7, %v558_v36 }
  0xfe   : > { %v834_v40 = vmax.f32 %v802_v32, 0.0  ;;  %v849_v47 = vmul.f32 %v817_v33, %v817_v33  ;;  %v865_v48 = vmul.f32 %v833_v34, %v833_v34  ;;  %v520_v3 = vpop.f32.mrf.mxu0  ;;  %v560_v49 = vpop.f32.mrf.mxu1 }
  0xff   : > { %v850_v51 = vmul.f32 %v818_v63, %v818_v63  ;;  %v819_v54 = vmax.f32 %v787_v44, 0.0  ;;  %v835_v55 = vmax.f32 %v803_v45, 0.0  ;;  %v788_v56 = vmul.f32 %v1573_v59, %v520_v3  ;;  %v1267_v59 = vpop.eup %1266 }
 0x100   : > { %v866_v53 = vmul.f32 %v834_v40, %v834_v40  ;;  %881 = vst [vmem:[%s1592_s27 + $0x40] sm:$0xff] %v849_v47  ;;  %897 = vst [vmem:[%s1592_s27 + $0xc0] sm:$0xff] %v865_v48  ;;  %v804_v57 = vmul.f32 %v1261_v39, %v560_v49  ;;  %v524_v52 = vpop.f32.mrf.mxu0  ;;  %v564_v58 = vpop.f32.mrf.mxu1 }
 0x101   : > { %882 = vst [vmem:[%s1592_s27 + $0x48] sm:$0xff] %v850_v51  ;;  %v851_v60 = vmul.f32 %v819_v54, %v819_v54  ;;  %v867_v61 = vmul.f32 %v835_v55, %v835_v55  ;;  %v789_v62 = vmul.f32 %v1596_v37, %v524_v52  ;;  %v805_v0 = vmul.f32 %v1263_v50, %v564_v58  ;;  %v1269_v13 = vpop.eup %1268 }
 0x102   : > { %898 = vst [vmem:[%s1592_s27 + $0xc8] sm:$0xff] %v866_v53  ;;  %v820_v1 = vmax.f32 %v788_v56, 0.0  ;;  %v836_v2 = vmax.f32 %v804_v57, 0.0  ;;  %v526_v4 = vpop.f32.mrf.mxu0  ;;  %v566_v5 = vpop.f32.mrf.mxu1 }
 0x103   : > { %883 = vst [vmem:[%s1592_s27 + $0x50] sm:$0xff] %v851_v60  ;;  %899 = vst [vmem:[%s1592_s27 + $0xd0] sm:$0xff] %v867_v61  ;;  %v821_v6 = vmax.f32 %v789_v62, 0.0  ;;  %v837_v7 = vmax.f32 %v805_v0, 0.0  ;;  %v790_v9 = vmul.f32 %v1601_v46, %v526_v4  ;;  %v806_v10 = vmul.f32 %v1265_v24, %v566_v5 }
 0x104   : > { %v852_v11 = vmul.f32 %v820_v1, %v820_v1  ;;  %v868_v37 = vmul.f32 %v836_v2, %v836_v2  ;;  %v528_v12 = vpop.f32.mrf.mxu0  ;;  %v568_v27 = vpop.f32.mrf.mxu1 }
 0x105   : > { %v853_v14 = vmul.f32 %v821_v6, %v821_v6  ;;  %v869_v15 = vmul.f32 %v837_v7, %v837_v7  ;;  %v822_v16 = vmax.f32 %v790_v9, 0.0  ;;  %v838_v38 = vmax.f32 %v806_v10, 0.0 }
 0x106   : > { %884 = vst [vmem:[%s1592_s27 + $0x58] sm:$0xff] %v852_v11  ;;  %900 = vst [vmem:[%s1592_s27 + $0xd8] sm:$0xff] %v868_v37  ;;  %v791_v46 = vmul.f32 %v1584_v8, %v528_v12  ;;  %v807_v17 = vmul.f32 %v1267_v59, %v568_v27  ;;  %v530_v18 = vpop.f32.mrf.mxu0  ;;  %v570_v19 = vpop.f32.mrf.mxu1 }
 0x107   : > { %885 = vst [vmem:[%s1592_s27 + $0x60] sm:$0xff] %v853_v14  ;;  %901 = vst [vmem:[%s1592_s27 + $0xe0] sm:$0xff] %v869_v15  ;;  %v854_v20 = vmul.f32 %v822_v16, %v822_v16  ;;  %v870_v21 = vmul.f32 %v838_v38, %v838_v38  ;;  %v792_v22 = vmul.f32 %v1589_v28, %v530_v18 }
 0x108   : > { %v808_v23 = vmul.f32 %v1269_v13, %v570_v19  ;;  %v823_v25 = vmax.f32 %v791_v46, 0.0  ;;  %v839_v26 = vmax.f32 %v807_v17, 0.0 }
 0x109   : > { %886 = vst [vmem:[%s1592_s27 + $0x68] sm:$0xff] %v854_v20  ;;  %902 = vst [vmem:[%s1592_s27 + $0xe8] sm:$0xff] %v870_v21  ;;  %v824_v8 = vmax.f32 %v792_v22, 0.0 }
 0x10a   : > { %v840_v43 = vmax.f32 %v808_v23, 0.0  ;;  %v855_v42 = vmul.f32 %v823_v25, %v823_v25  ;;  %v871_v29 = vmul.f32 %v839_v26, %v839_v26 }
 0x10b   : > { %v856_v28 = vmul.f32 %v824_v8, %v824_v8 }
 0x10c   : > { %v872_v30 = vmul.f32 %v840_v43, %v840_v43  ;;  %887 = vst [vmem:[%s1592_s27 + $0x70] sm:$0xff] %v855_v42  ;;  %903 = vst [vmem:[%s1592_s27 + $0xf0] sm:$0xff] %v871_v29 }
 0x10d   : > { %888 = vst [vmem:[%s1592_s27 + $0x78] sm:$0xff] %v856_v28 }
 0x10e   : > { %904 = vst [vmem:[%s1592_s27 + $0xf8] sm:$0xff] %v872_v30 }
 0x10f   : > { %1283 = shalt.err (!%p1280_p7)
}
 0x110   : > { %s1284_s9 = scalar_lea.hbm %s1647_s11, 4096  ;;  %s1288_s5 = scalar_lea.hbm %s1712_s4, 16384 }
 0x111   : > { %p1285_p9 = scmp.ne.s32.totalorder %s1647_s11, %s1284_s9  ;;  %p1289_p12 = scmp.lt.s32.totalorder %s1647_s11, %s1712_s4 }
 0x112   : > { %p1290_p13 = scmp.lt.s32.totalorder %s1288_s5, %s1284_s9 }
 0x113   : > { %p1286_p10 = pnand %p1285_p9, %p1444_p3 }
 0x114   : > { %p1291_p0 = por %p1290_p13, %p1289_p12 }
 0x115   : > { %p1287_p11 = pneg %p1286_p10 }
 0x117   : > { %p1292_p1 = pnand %p1291_p0, %p1287_p11 }
 0x119   : > { %1295 = shalt.err (!%p1292_p1)
}
 0x11a   : > { %s1366_s8 = smov 256   ;;  %s1367_s10 = smov 16  }
 0x11b   : > { %1113 = dma.vmem_to_hbm [thread:$0]  (%p1444_p3), %s1649_s6, 4096, %s1647_s11, %s1657_s12, %s1366_s8, %s1366_s8, %s1367_s10  }
 0x11c PF: > { %p1119_p2 = scmp.ge.s32.totalorder %s1362_s22, 2  ;;  %s939_s13 = sand.u32 1, %s1334_s15  }
 0x11d   : > { %s940_s14 = scalar_lea.sflag [#allocation3], %s939_s13 }
 0x11e   : > { %p1116_p4 = pnand %p1119_p2, %p1453_p8 }
 0x120   : > { %p1117_p5 = pneg %p1116_p4 }
 0x122   : > { %1329 = dma.done.wait (%p1117_p5), %s940_s14, 4096  }
 0x123   : > { %1331 = vsyncadd (%p1117_p5), %s940_s14, 4294963200  ;;  %s17_s22 = sadd.s32 1, %s1362_s22   ;;  %s1715_s15 = smov %s1338_s16 }
 0x124   : > { %p14_p6 = scmp.ge.s32.totalorder %s17_s22, 6   ;;  %s1716_s16 = smov %s1342_s17 }
 0x125   : > { %s1717_s17 = smov %s1462_s7  ;;  %s1718_s18 = smov %s1354_s20 }
 0x126   : > { %s1719_s19 = smov %s1358_s21  ;;  %s1720_s20 = smov %s1723_s25 }
 0x127   : > { %s1721_s21 = smov %s1727_s26  ;;  %16 = sbr.rel (!%p14_p6) target bundleno = 5 (0x5), region = 80 }
 0x12c   :  { %945 = vsyncpa [#allocation3], 1 }
 0x12d   :  { %947 = vsyncpa [#allocation3 + $0x1], 1 }

</bundles_post_ra>
